<compile_context>
chip_gen: v7x
topology: tpu7x:2x2x1
jax: 0.10.0
libtpu: 0.0.40
codegen_flags: <defaults>
</compile_context>

<pallas_src>
import math

import jax
import jax.numpy as jnp
from jax.experimental import pallas as pl
from jax.experimental.pallas import tpu as pltpu


# ---------------------------------------------------------------------------
# Parameter / buffer construction (matches PositionalEncoding.__init__)
# ---------------------------------------------------------------------------
def make_positional_encoding(d_model: int, max_len: int = 10,
                             dtype=jnp.float32) -> jnp.ndarray:
    """Builds the (max_len, d_model) sinusoidal table.

    PyTorch stores it as (max_len, 1, d_model); forward slices / unsqueezes /
    squeezes it back to (1, S, d_model), so the 2-D (max_len, d_model) form is
    semantically identical.  Like the PyTorch original, assumes even d_model.
    """
    position = jnp.arange(max_len, dtype=jnp.float32)[:, None]          # (L, 1)
    div_term = jnp.exp(
        jnp.arange(0, d_model, 2, dtype=jnp.float32)
        * (-math.log(10000.0) / d_model)
    )                                                                   # (D/2,)
    pe = jnp.zeros((max_len, d_model), dtype=jnp.float32)
    pe = pe.at[:, 0::2].set(jnp.sin(position * div_term))
    pe = pe.at[:, 1::2].set(jnp.cos(position * div_term))
    return pe.astype(dtype)


# ---------------------------------------------------------------------------
# Tile selection helpers (lane-dense, ~2 MiB x-tiles)
# ---------------------------------------------------------------------------
_LANE = 128
_SUBLANE = 8
_TARGET_TILE_BYTES = 2 * 1024 * 1024   # ~2 MiB x-tile; double-buffered footprint is v5e-safe
_VMEM_FOOTPRINT_CAP = 48 * 1024 * 1024  # give up on Pallas beyond this (v7x has 64 MiB VMEM)


def _largest_aligned_divisor(dim: int, unit: int, cap: int) -> int:
    """Largest multiple of `unit` that divides `dim` and is <= cap.

    If `dim` is not a multiple of `unit`, the only legal block extent is the full
    dimension (BlockSpec allows full-extent dims), so return `dim`.
    """
    if dim % unit != 0:
        return dim
    cand = (min(cap, dim) // unit) * unit
    while cand >= unit:
        if dim % cand == 0:
            return cand
        cand -= unit
    return unit  # cap < unit; `unit` always divides `dim` here.


def _choose_tiles(num_rows: int, num_cols: int, itemsize: int, target_tile_bytes: int):
    """Pick (row_tile, col_tile) for the flattened (B, S*D) problem."""
    max_elems = max(target_tile_bytes // itemsize, _LANE)
    if num_rows % _SUBLANE == 0:
        # Rows can be tiled in sublane multiples; keep room for >= 8 rows per tile.
        tn = _largest_aligned_divisor(num_cols, _LANE,
                                      max(max_elems // _SUBLANE, _LANE))
        tb = _largest_aligned_divisor(num_rows, _SUBLANE,
                                      max(max_elems // tn, _SUBLANE))
    else:
        # Small / unaligned batch dim: take it whole, spend the budget on lanes.
        tb = num_rows
        tn = _largest_aligned_divisor(num_cols, _LANE,
                                      max(max_elems // max(tb, 1), _LANE))
    return tb, tn


# ---------------------------------------------------------------------------
# Pallas kernel: out[r, c] = x[r, c] + pe[0, c]   (flattened, lane-dense layout)
# ---------------------------------------------------------------------------
def _pe_add_kernel(x_ref, pe_ref, o_ref):
    # x_ref, o_ref: (TB, TN); pe_ref: (1, TN).  Plain VPU add with a natural
    # sublane broadcast of the pe tile; no broadcast_in_dim materialization.
    o_ref[...] = x_ref[...] + pe_ref[...]


def positional_encoding_forward(x: jnp.ndarray, pe: jnp.ndarray,
                                *, donate_x: bool = False,
                                target_tile_bytes: int = _TARGET_TILE_BYTES
                                ) -> jnp.ndarray:
    """x: (B, S, D); pe: (max_len, D) with S <= max_len.  Returns x + pe[:S][None]."""
    B, S, D = x.shape
    assert S <= pe.shape[0], "seq_len exceeds positional-encoding max_len"
    N = S * D
    dtype = x.dtype
    itemsize = jnp.dtype(dtype).itemsize

    # Lane-dense flatten + pre-cast pe to x.dtype (halves pe DMA bytes for bf16 x).
    x_flat = x.reshape(B, N)
    pe_flat = pe[:S].astype(dtype).reshape(1, N)

    tb, tn = _choose_tiles(B, N, itemsize, target_tile_bytes)
    grid_n = N // tn
    grid_b = B // tb

    # Explicit scoped-VMEM budget: double-buffered x-in, out and pe tiles + headroom.
    x_tile_bytes = tb * tn * itemsize
    pe_tile_bytes = tn * itemsize
    footprint = 2 * (2 * x_tile_bytes + pe_tile_bytes)
    if footprint > _VMEM_FOOTPRINT_CAP:
        # Pathological unaligned-huge dims: the only legal full-extent tile would not
        # fit VMEM.  Fall back to the fused XLA add (still a single HBM pass).
        return (x_flat + pe_flat).reshape(B, S, D)

    vmem_limit_bytes = int(min(max(footprint + (2 << 20), 4 << 20), 32 << 20))

    out_flat = pl.pallas_call(
        _pe_add_kernel,
        out_shape=jax.ShapeDtypeStruct((B, N), dtype),
        grid_spec=pltpu.PrefetchScalarGridSpec(
            num_scalar_prefetch=0,
            # Column tiles outer, row (batch) tiles inner: pe's block index is
            # constant along the inner axis, so each pe tile is fetched once.
            grid=(grid_n, grid_b),
            in_specs=[
                pl.BlockSpec((tb, tn), lambda j, i: (i, j)),   # x
                pl.BlockSpec((1, tn), lambda j, i: (0, j)),    # pe (shared over rows)
            ],
            out_specs=pl.BlockSpec((tb, tn), lambda j, i: (i, j)),
        ),
        compiler_params=pltpu.CompilerParams(
            dimension_semantics=("parallel", "parallel"),   # independent tiles (megacore)
            vmem_limit_bytes=vmem_limit_bytes,
        ),
        # Optional in-place update when the caller can donate x (no extra HBM buffer).
        input_output_aliases=({0: 0} if donate_x else {}),
    )(x_flat, pe_flat)

    return out_flat.reshape(B, S, D)


# ---------------------------------------------------------------------------
# Dispatcher: tiny inputs are cheaper as a plain fused XLA add.
# ---------------------------------------------------------------------------
_PALLAS_MIN_ELEMENTS = 1 << 16   # below ~64K elements, launch/per-step overhead dominates


def positional_encoding(x: jnp.ndarray, pe: jnp.ndarray) -> jnp.ndarray:
    B, S, D = x.shape
    if B * S * D < _PALLAS_MIN_ELEMENTS:
        return x + pe[:S].astype(x.dtype)[None, :, :]
    return positional_encoding_forward(x, pe)


# ---------------------------------------------------------------------------
# Demo / correctness check
# ---------------------------------------------------------------------------
if __name__ == "__main__":
    key = jax.random.PRNGKey(0)
    k1, k2, k3 = jax.random.split(key, 3)

    # Case 1: module-default small shapes (batch=2, seq=8, d_model=32, max_len=10).
    B, S, D, MAX_LEN = 2, 8, 32, 10
    x = jax.random.normal(k1, (B, S, D), dtype=jnp.float32)
    pe = make_positional_encoding(D, max_len=MAX_LEN, dtype=jnp.float32)

    out = jax.block_until_ready(positional_encoding_forward(x, pe))   # force Pallas path
    ref = x + pe[:S][None, :, :]
    assert out.shape == (B, S, D)
    assert jnp.allclose(out, ref, atol=1e-6, rtol=1e-6)

    # Dispatcher fallback (tiny shape -> plain XLA add) must agree too.
    out_disp = jax.block_until_ready(positional_encoding(x, pe))
    assert jnp.allclose(out_disp, ref, atol=1e-6, rtol=1e-6)

    # Case 2: sublane-aligned batch, bf16 activations (exercises pe pre-cast path).
    B2, S2, D2 = 8, 64, 256
    x2 = jax.random.normal(k2, (B2, S2, D2), dtype=jnp.float32).astype(jnp.bfloat16)
    pe2 = make_positional_encoding(D2, max_len=S2, dtype=jnp.float32)
    out2 = jax.block_until_ready(positional_encoding_forward(x2, pe2))
    ref2 = (x2.astype(jnp.float32)
            + pe2[:S2].astype(jnp.bfloat16).astype(jnp.float32)[None, :, :])
    assert out2.dtype == jnp.bfloat16
    assert jnp.allclose(out2.astype(jnp.float32), ref2, atol=2e-2, rtol=2e-2)

    # Case 3: shrink the tile budget to force a real multi-tile (2 x 2) grid and
    # validate every index_map / pe-sharing combination.
    B3, S3, D3 = 16, 64, 256
    x3 = jax.random.normal(k3, (B3, S3, D3), dtype=jnp.float32)
    pe3 = make_positional_encoding(D3, max_len=S3, dtype=jnp.float32)
    out3 = jax.block_until_ready(
        positional_encoding_forward(x3, pe3, target_tile_bytes=256 * 1024))
    ref3 = x3 + pe3[:S3][None, :, :]
    assert jnp.allclose(out3, ref3, atol=1e-6, rtol=1e-6)

    print("KERNEL_OK")
</pallas_src>

<mosaic_0001>
module attributes {stable_mosaic.version = 11 : i64} {
  func.func @_pe_add_kernel(%arg0: i32, %arg1: i32, %arg2: memref<2x256xf32, #tpu.memory_space<vmem>>, %arg3: memref<1x256xf32, #tpu.memory_space<vmem>>, %arg4: memref<2x256xf32, #tpu.memory_space<vmem>>) attributes {dimension_semantics = [#tpu.dimension_semantics<parallel>, #tpu.dimension_semantics<parallel>], iteration_bounds = array<i64: 1, 1>, scalar_prefetch = 0 : i64, scratch_operands = 0 : i64, tpu.core_type = #tpu.core_type<tc>, window_params = [{transform_indices = @transform_0, window_bounds = array<i64: 2, 256>}, {transform_indices = @transform_1, window_bounds = array<i64: 1, 256>}, {transform_indices = @transform_2, window_bounds = array<i64: 2, 256>}]} {
    %c0 = arith.constant 0 : index
    %c0_0 = arith.constant 0 : index
    %0 = vector.load %arg2[%c0, %c0_0] : memref<2x256xf32, #tpu.memory_space<vmem>>, vector<2x256xf32>
    %c0_1 = arith.constant 0 : index
    %c0_2 = arith.constant 0 : index
    %1 = vector.load %arg3[%c0_1, %c0_2] : memref<1x256xf32, #tpu.memory_space<vmem>>, vector<1x256xf32>
    %2 = vector.broadcast %1 : vector<1x256xf32> to vector<2x256xf32>
    %3 = arith.addf %0, %2 : vector<2x256xf32>
    %c0_3 = arith.constant 0 : index
    %c0_4 = arith.constant 0 : index
    %4 = vector.load %arg4[%c0_3, %c0_4] : memref<2x256xf32, #tpu.memory_space<vmem>>, vector<2x256xf32>
    tpu.vector_store %arg4[%c0_3, %c0_4], %3 {strides = array<i32>} : memref<2x256xf32, #tpu.memory_space<vmem>>, vector<2x256xf32>,
    return
  }
  func.func @transform_0(%arg0: i32, %arg1: i32) -> (i32, i32) {
    %c0_i32 = arith.constant 0 : i32
    return %arg1, %arg0 : i32, i32
  }
  func.func @transform_1(%arg0: i32, %arg1: i32) -> (i32, i32) {
    %c0_i32 = arith.constant 0 : i32
    %c0_i32_0 = arith.constant 0 : i32
    return %c0_i32, %arg0 : i32, i32
  }
  func.func @transform_2(%arg0: i32, %arg1: i32) -> (i32, i32) {
    %c0_i32 = arith.constant 0 : i32
    return %arg1, %arg0 : i32, i32
  }
}

</mosaic_0001>

<bundles_post_ra>
// kernel: tpu_custom_call.1
= control target key start
LH: loop header
LB: loop body
LE: loop exit
PB: predicated region body
PF: predicated region fallthrough
CT: control target
= control target key end

     0   :  { %7 = vsyncpa [#allocation3], 0  ;;  %s157_s0 = inlined_call_operand.hbm [shape: f32[2,256], index: 0, kind: input, shape index: {}]   ;;  %s158_s1 = inlined_call_operand.vmem [shape: f32[1,256], index: 1, kind: input, shape index: {}]   ;;  %s159_s2 = inlined_call_operand.hbm [shape: f32[2,256], index: 2, kind: output, shape index: {}]  }
   0x1   :  { %8 = vsyncpa [#allocation4], 0  ;;  %s112_s9 = smov [#allocation2]   ;;  %s64_s13 = scalar_lea.hbm %s157_s0, 64 }
   0x2   :  { %s15_s10 = sshll.u32 %s112_s9, 4  ;;  %p65_p0 = scmp.ne.s32.totalorder %s157_s0, %s64_s13  ;;  %s16_s10 = int_to_ptr.vmem [resolvable:$true] %s15_s10 }
   0x3   :  { %p68_p1 = scmp.lt.u32.totalorder %s64_s13, %s157_s0 }
   0x5   :  { %p70_p2 = pnand %p68_p1, %p65_p0 }
   0x7   :  { %73 = shalt.err (!%p70_p2)
}
   0x8   :  { %s74_s18 = scalar_lea.vmem %s16_s10, 64  ;;  %p79_p4 = scmp.lt.s32.totalorder %s16_s10, %s16_s10 }
   0x9   :  { %p75_p3 = scmp.ne.s32.totalorder %s16_s10, %s74_s18  ;;  %p80_p5 = scmp.lt.s32.totalorder %s74_s18, %s74_s18 }
   0xb   :  { %p81_p6 = por %p80_p5, %p79_p4 }
   0xd   :  { %p82_p7 = pnand %p81_p6, %p75_p3 }
   0xf   :  { %85 = shalt.err (!%p82_p7)
}
  0x10   :  { %18 = dma.hbm_to_vmem [thread:$0]  %s157_s0, 64, %s16_s10, [#allocation3]  }
  0x11   :  { %108 = dma.done.wait [#allocation3], 64  }
  0x12   :  { %109 = vsyncadd [#allocation3], 4294967232  ;;  %v27_v0 = vlaneseq  ;;  %v113_v1 = vmov 1983009808   ;;  %v25_v7 = vld [vmem:[%s158_s1] sm:$0x3] }
  0x13   :  { %v37_v2 = vunpack.c.l.s4 %v113_v1  ;;  %v24_v12 = vld [vmem:[#allocation2] sm:$0xf]  ;;  %s114_s23 = smov [#allocation5]  }
  0x14   :  { %v28_v3 = vshrl.u32 %v27_v0, 7  ;;  %s52_s0 = sshll.u32 %s114_s23, 4  ;;  %s53_s0 = int_to_ptr.vmem [resolvable:$true] %s52_s0 }
  0x15   :  { %v38_v6 = vunpack.c.0.s8 %v37_v2  ;;  %s86_s24 = scalar_lea.vmem %s53_s0, 64  ;;  %p91_p9 = scmp.lt.s32.totalorder %s53_s0, %s53_s0 }
  0x16   :  { %v29_v4 = vsub.s32 0, %v28_v3  ;;  %v33_v5 = vsub.s32 1, %v28_v3  ;;  %p87_p8 = scmp.ne.s32.totalorder %s53_s0, %s86_s24  ;;  %p92_p10 = scmp.lt.s32.totalorder %s86_s24, %s86_s24 }
  0x17   :  { %v41_v10 = vsub.s32 %v38_v6, %v28_v3 }
  0x18   :  { %v30_v8 = vrot.slane %v25_v7, %v29_v4  ;;  %v34_v9 = vrot.slane %v25_v7, %v33_v5  ;;  %p93_p11 = por %p92_p10, %p91_p9 }
  0x1a   :  { %v35_v11 = vcombine.low %v30_v8, %v34_v9  ;;  %p94_p12 = pnand %p93_p11, %p87_p8 }
  0x1c   :  { %v42_v13 = vrot.slane %v35_v11, %v41_v10 }
  0x1e   :  { %v44_v14 = vadd.f32 %v42_v13, %v24_v12 }
  0x20   :  { %45 = vst [vmem:[#allocation5] sm:$0xf] %v44_v14 }
  0x21   :  { %97 = shalt.err (!%p94_p12)
}
  0x22   :  { %s98_s26 = scalar_lea.hbm %s159_s2, 64 }
  0x23   :  { %p99_p13 = scmp.ne.s32.totalorder %s159_s2, %s98_s26  ;;  %p102_p0 = scmp.lt.u32.totalorder %s98_s26, %s159_s2 }
  0x25   :  { %p104_p1 = pnand %p102_p0, %p99_p13 }
  0x27   :  { %107 = shalt.err (!%p104_p1)
}
  0x28   :  { %55 = dma.vmem_to_hbm [thread:$0]  %s53_s0, 64, %s159_s2, [#allocation4]  }
  0x29   :  { %110 = dma.done.wait [#allocation4], 64  }
  0x2a   :  { %111 = vsyncadd [#allocation4], 4294967232 }
  0x2b   :  { %59 = vsyncpa [#allocation3], 1 }
  0x2c   :  { %60 = vsyncpa [#allocation4], 1 }

</bundles_post_ra>
